<compile_context>
chip_gen: v6e
topology: v6e:2x2x1
jax: 0.10.0
libtpu: 0.0.40
codegen_flags: <defaults>
</compile_context>

<pallas_src>
import functools

import numpy as np
import jax
import jax.numpy as jnp
from jax import lax
from jax.experimental import pallas as pl
from jax.experimental.pallas import tpu as pltpu


def _softplus(x):
    # Matches torch.nn.Softplus(beta=1, threshold=20): linear above threshold.
    # TODO(synk): exp(x) in the discarded branch overflows to inf (selected
    # away) -- fine for forward, would NaN if differentiated through.
    return jnp.where(x > 20.0, x, jnp.log1p(jnp.exp(x)))


def _mlp_kernel(layer_dims, x_ref, w_ref, b_ref, out_ref):
    """MLP forward for one batch tile.

    x_ref:   [TB, in_0]     row-major activations (contiguous DMA window)
    w_ref:   [L, MO, MI]    padded weight slab, torch layout [out, in] per layer
    b_ref:   [L, MO, 1]     padded bias slab (column vectors)
    out_ref: [out_L, TB]    softmax probabilities, batch on lanes
    """
    n_layers = len(layer_dims)
    h = None
    for l, (din, dout) in enumerate(layer_dims):
        w = w_ref[l, :dout, :din]                          # [dout, din]
        b = b_ref[l, :dout, :]                             # [dout, 1]
        if l == 0:
            # Contract W's "in" axis with x-tile's feature axis: the tiny
            # (TB, din) -> (din, TB) "transpose" is absorbed by the MXU
            # dimension numbers. Result is feature-major [dout, TB].
            z = lax.dot_general(
                w, x_ref[...],
                dimension_numbers=(((1,), (1,)), ((), ())),
                preferred_element_type=jnp.float32) + b
        else:
            z = jnp.dot(w, h, preferred_element_type=jnp.float32) + b
        if l != n_layers - 1:
            h = _softplus(z)
        else:
            # Softmax over the logit axis (axis 0 here == torch dim=1) --
            # a cheap sublane reduction since batch sits on lanes.
            m = jnp.max(z, axis=0, keepdims=True)
            e = jnp.exp(z - m)
            h = e / jnp.sum(e, axis=0, keepdims=True)
    out_ref[...] = h.astype(out_ref.dtype)


def pack_params(weights, biases):
    """Pack per-layer params into padded slabs ONCE (host-side, numpy).

    Call this after every parameter update, not per forward call: the per-call
    path is then just (optional row pad) + 1 pallas_call + a tiny transpose.
    """
    assert len(weights) == len(biases)
    n_layers = len(weights)
    layer_dims = tuple((int(w.shape[1]), int(w.shape[0])) for w in weights)
    mo = max(d[1] for d in layer_dims)
    mi = max(d[0] for d in layer_dims)
    w_slab = np.zeros((n_layers, mo, mi), dtype=np.float32)
    b_slab = np.zeros((n_layers, mo, 1), dtype=np.float32)
    for i, (w, b) in enumerate(zip(weights, biases)):
        w_np = np.asarray(w, dtype=np.float32)
        b_np = np.asarray(b, dtype=np.float32)
        w_slab[i, : w_np.shape[0], : w_np.shape[1]] = w_np
        b_slab[i, : b_np.shape[0], 0] = b_np
    return {
        "w_slab": jnp.asarray(w_slab),
        "b_slab": jnp.asarray(b_slab),
        "layer_dims": layer_dims,
        "in_size": layer_dims[0][0],
        "out_size": layer_dims[-1][1],
    }


def _choose_batch_tile(batch, block_batch):
    """Pick a 128-multiple batch tile.

    Large tiles amortize the ~0.35us per-grid-step overhead; but for batches
    big enough we keep >= 2 grid steps so the ("parallel",) axis can be
    sharded across v7x's 2 TensorCores (harmless on v5e/v6e).
    """
    b128 = pl.cdiv(batch, 128) * 128
    if b128 <= 128:
        return 128
    half = pl.cdiv(b128 // 128, 2) * 128          # ~half the batch, 128-aligned
    return max(128, min(block_batch, half))


def policy_forward(x, packed, *, block_batch=4096):
    """Full MLP forward in one Pallas call, tiled over the batch.

    x:      [batch, input_size] float32 (row-major, as produced by the env)
    packed: output of pack_params()
    """
    assert block_batch % 128 == 0
    batch, in_size = x.shape
    assert in_size == packed["in_size"]
    out_size = packed["out_size"]
    layer_dims = packed["layer_dims"]
    w_slab = packed["w_slab"]
    b_slab = packed["b_slab"]
    n_layers, mo, mi = w_slab.shape

    tb = _choose_batch_tile(batch, block_batch)
    b_pad = pl.cdiv(batch, tb) * tb
    if b_pad != batch:
        # Row-only pad (no transpose); zero rows stay isolated per batch column
        # through the whole network and are sliced away after the call.
        x = jnp.pad(x, ((0, b_pad - batch), (0, 0)))

    kernel = functools.partial(_mlp_kernel, layer_dims)

    out_t = pl.pallas_call(
        kernel,
        out_shape=jax.ShapeDtypeStruct((out_size, b_pad), jnp.float32),
        grid_spec=pltpu.PrefetchScalarGridSpec(
            num_scalar_prefetch=0,
            grid=(b_pad // tb,),
            in_specs=[
                # Activations: contiguous row-major batch tile each grid step.
                pl.BlockSpec((tb, in_size), lambda i: (i, 0)),
                # Param slabs: same block every step -> resident in VMEM.
                pl.BlockSpec((n_layers, mo, mi), lambda i: (0, 0, 0)),
                pl.BlockSpec((n_layers, mo, 1), lambda i: (0, 0, 0)),
            ],
            out_specs=pl.BlockSpec((out_size, tb), lambda i: (0, i)),
        ),
        compiler_params=pltpu.CompilerParams(
            # Batch axis is embarrassingly parallel -> megacore sharding on v7x.
            dimension_semantics=("parallel",),
            # Plenty of headroom; actual use at TB=4096 is a few MiB.
            vmem_limit_bytes=32 * 1024 * 1024,
        ),
    )(x, w_slab, b_slab)

    # Back to [batch, out_size] (tiny transpose of a [out_size, batch] slab).
    return out_t[:, :batch].T


def init_params(key, input_size, output_size, hidden_layer_sizes):
    """Deterministic Xavier-normal weights (torch [out, in] layout), zero biases."""
    sizes = [input_size] + list(hidden_layer_sizes) + [output_size]
    weights, biases = [], []
    for i in range(len(sizes) - 1):
        fan_in, fan_out = sizes[i], sizes[i + 1]
        key, sub = jax.random.split(key)
        std = (2.0 / (fan_in + fan_out)) ** 0.5
        w = std * jax.random.normal(sub, (fan_out, fan_in), dtype=jnp.float32)
        b = jnp.zeros((fan_out,), dtype=jnp.float32)
        weights.append(w)
        biases.append(b)
    return weights, biases


def reference_forward(x, weights, biases):
    h = x
    for i, (w, b) in enumerate(zip(weights, biases)):
        z = h @ w.T + b
        if i != len(weights) - 1:
            h = jnp.where(z > 20.0, z, jnp.log1p(jnp.exp(z)))
        else:
            h = jax.nn.softmax(z, axis=1)
    return h


if __name__ == "__main__":
    # CartPole-like sizes: 4 observations -> hidden [32] -> 2 actions.
    input_size, output_size = 4, 2
    hidden_layer_sizes = [32]

    key = jax.random.PRNGKey(0)
    key, k_small, k_big = jax.random.split(key, 3)
    weights, biases = init_params(key, input_size, output_size, hidden_layer_sizes)

    # Pack params once (per parameter update), not per forward call.
    packed = pack_params(weights, biases)

    # Small batch (single-env rollout style): exercises the row-padding path.
    x_small = jax.random.normal(k_small, (8, input_size), dtype=jnp.float32)
    # Larger batch: exercises the multi-step parallel batch grid (2 tiles).
    x_big = jax.random.normal(k_big, (1024, input_size), dtype=jnp.float32)

    for x in (x_small, x_big):
        out = jax.block_until_ready(policy_forward(x, packed))
        ref = reference_forward(x, weights, biases)
        assert out.shape == (x.shape[0], output_size)
        assert jnp.allclose(out, ref, atol=1e-5, rtol=1e-5), "mismatch vs reference"
        assert jnp.allclose(jnp.sum(out, axis=1), 1.0, atol=1e-5)

    print("KERNEL_OK")
</pallas_src>

<mosaic_0001>
module attributes {stable_mosaic.version = 11 : i64} {
  func.func @_mlp_kernel(%arg0: i32, %arg1: memref<128x4xf32, #tpu.memory_space<vmem>>, %arg2: memref<2x32x32xf32, #tpu.memory_space<vmem>>, %arg3: memref<2x32x1xf32, #tpu.memory_space<vmem>>, %arg4: memref<2x128xf32, #tpu.memory_space<vmem>>) attributes {dimension_semantics = [#tpu.dimension_semantics<parallel>], iteration_bounds = array<i64: 1>, scalar_prefetch = 0 : i64, scratch_operands = 0 : i64, tpu.core_type = #tpu.core_type<tc>, window_params = [{transform_indices = @transform_0, window_bounds = array<i64: 128, 4>}, {pipeline_mode = #tpu.pipeline_mode<synchronous>, transform_indices = @transform_1, window_bounds = array<i64: 2, 32, 32>}, {pipeline_mode = #tpu.pipeline_mode<synchronous>, transform_indices = @transform_2, window_bounds = array<i64: 2, 32, 1>}, {transform_indices = @transform_3, window_bounds = array<i64: 2, 128>}]} {
    %c0 = arith.constant 0 : index
    %c0_0 = arith.constant 0 : index
    %c0_1 = arith.constant 0 : index
    %0 = vector.load %arg2[%c0, %c0_0, %c0_1] : memref<2x32x32xf32, #tpu.memory_space<vmem>>, vector<1x32x4xf32>
    %1 = vector.shape_cast %0 : vector<1x32x4xf32> to vector<32x4xf32>
    %c0_2 = arith.constant 0 : index
    %c0_3 = arith.constant 0 : index
    %c0_4 = arith.constant 0 : index
    %2 = vector.load %arg3[%c0_2, %c0_3, %c0_4] : memref<2x32x1xf32, #tpu.memory_space<vmem>>, vector<1x32x1xf32>
    %3 = vector.shape_cast %2 : vector<1x32x1xf32> to vector<32x1xf32>
    %c0_5 = arith.constant 0 : index
    %c0_6 = arith.constant 0 : index
    %4 = vector.load %arg1[%c0_5, %c0_6] : memref<128x4xf32, #tpu.memory_space<vmem>>, vector<128x4xf32>
    %cst = arith.constant dense<0.000000e+00> : vector<32x128xf32>
    %5 = tpu.matmul %1, %4, %cst {dimension_numbers = #tpu.dot_dimension_numbers<[1], [1], [0], [0], [0, 0, 1, 0], [], []>} : vector<32x4xf32>, vector<128x4xf32>, vector<32x128xf32> -> vector<32x128xf32>
    %6 = vector.broadcast %3 : vector<32x1xf32> to vector<32x128xf32>
    %7 = arith.addf %5, %6 : vector<32x128xf32>
    %cst_7 = arith.constant 2.000000e+01 : f32
    %8 = vector.broadcast %cst_7 : f32 to vector<32x128xf32>
    %9 = arith.cmpf ogt, %7, %8 : vector<32x128xf32>
    %10 = math.exp %7 : vector<32x128xf32>
    %11 = math.log1p %10 : vector<32x128xf32>
    %12 = arith.select %9, %7, %11 : vector<32x128xi1>, vector<32x128xf32>
    %c1 = arith.constant 1 : index
    %c0_8 = arith.constant 0 : index
    %c0_9 = arith.constant 0 : index
    %13 = vector.load %arg2[%c1, %c0_8, %c0_9] : memref<2x32x32xf32, #tpu.memory_space<vmem>>, vector<1x2x32xf32>
    %14 = vector.shape_cast %13 : vector<1x2x32xf32> to vector<2x32xf32>
    %c1_10 = arith.constant 1 : index
    %c0_11 = arith.constant 0 : index
    %c0_12 = arith.constant 0 : index
    %15 = vector.load %arg3[%c1_10, %c0_11, %c0_12] : memref<2x32x1xf32, #tpu.memory_space<vmem>>, vector<1x2x1xf32>
    %16 = vector.shape_cast %15 : vector<1x2x1xf32> to vector<2x1xf32>
    %cst_13 = arith.constant dense<0.000000e+00> : vector<2x128xf32>
    %17 = tpu.matmul %14, %12, %cst_13 {dimension_numbers = #tpu.dot_dimension_numbers<[1], [0], [0], [1], [0, 0, 1, 1], [], []>} : vector<2x32xf32>, vector<32x128xf32>, vector<2x128xf32> -> vector<2x128xf32>
    %18 = vector.broadcast %16 : vector<2x1xf32> to vector<2x128xf32>
    %19 = arith.addf %17, %18 : vector<2x128xf32>
    %cst_14 = arith.constant dense<0xFF800000> : vector<128xf32>
    %20 = vector.multi_reduction <maximumf>, %19, %cst_14 [0] : vector<2x128xf32> to vector<128xf32>
    %21 = vector.shape_cast %20 : vector<128xf32> to vector<1x128xf32>
    %22 = vector.broadcast %21 : vector<1x128xf32> to vector<2x128xf32>
    %23 = arith.subf %19, %22 : vector<2x128xf32>
    %24 = math.exp %23 : vector<2x128xf32>
    %cst_15 = arith.constant dense<0.000000e+00> : vector<128xf32>
    %25 = vector.multi_reduction <add>, %24, %cst_15 [0] : vector<2x128xf32> to vector<128xf32>
    %26 = vector.shape_cast %25 : vector<128xf32> to vector<1x128xf32>
    %27 = vector.broadcast %26 : vector<1x128xf32> to vector<2x128xf32>
    %28 = arith.divf %24, %27 : vector<2x128xf32>
    %c0_16 = arith.constant 0 : index
    %c0_17 = arith.constant 0 : index
    %29 = vector.load %arg4[%c0_16, %c0_17] : memref<2x128xf32, #tpu.memory_space<vmem>>, vector<2x128xf32>
    tpu.vector_store %arg4[%c0_16, %c0_17], %28 {strides = array<i32>} : memref<2x128xf32, #tpu.memory_space<vmem>>, vector<2x128xf32>,
    return
  }
  func.func @transform_0(%arg0: i32) -> (i32, i32) {
    %c0_i32 = arith.constant 0 : i32
    %c0_i32_0 = arith.constant 0 : i32
    return %arg0, %c0_i32 : i32, i32
  }
  func.func @transform_1(%arg0: i32) -> (i32, i32, i32) {
    %c0_i32 = arith.constant 0 : i32
    %c0_i32_0 = arith.constant 0 : i32
    %c0_i32_1 = arith.constant 0 : i32
    %c0_i32_2 = arith.constant 0 : i32
    return %c0_i32, %c0_i32_0, %c0_i32_1 : i32, i32, i32
  }
  func.func @transform_2(%arg0: i32) -> (i32, i32, i32) {
    %c0_i32 = arith.constant 0 : i32
    %c0_i32_0 = arith.constant 0 : i32
    %c0_i32_1 = arith.constant 0 : i32
    %c0_i32_2 = arith.constant 0 : i32
    return %c0_i32, %c0_i32_0, %c0_i32_1 : i32, i32, i32
  }
  func.func @transform_3(%arg0: i32) -> (i32, i32) {
    %c0_i32 = arith.constant 0 : i32
    %c0_i32_0 = arith.constant 0 : i32
    return %c0_i32, %arg0 : i32, i32
  }
}

</mosaic_0001>

<bundles_post_ra>
// kernel: tpu_custom_call.1
= control target key start
LH: loop header
LB: loop body
LE: loop exit
PB: predicated region body
PF: predicated region fallthrough
CT: control target
= control target key end

     0   :  { %vm59_vm0 = vcmask 31744   ;;  %v520_v2 = vmov 0   ;;  %s676_s0 = inlined_call_operand.vmem [shape: f32[128,4], index: 0, kind: input, shape index: {}]   ;;  %s677_s1 = inlined_call_operand.vmem [shape: f32[2,32,32], index: 1, kind: input, shape index: {}]   ;;  %s678_s2 = inlined_call_operand.vmem [shape: f32[2,32,1], index: 2, kind: input, shape index: {}]   ;;  %s679_s3 = inlined_call_operand.hbm [shape: f32[2,128], index: 3, kind: output, shape index: {}]  }
   0x1   :  { %v38_v0 = vld [vmem:[%s676_s0 + $0x78] sm:$0xff]  ;;  %v37_v1 = vld [vmem:[%s676_s0 + $0x70] sm:$0xff]  ;;  %476 = vset.pattern.permute.xlu0 %v520_v2  ;;  %477 = vset.pattern.permute.xlu1 %v520_v2  ;;  %v36_v3 = vld [vmem:[%s676_s0 + $0x68] sm:$0xff] }
   0x2   :  { %423 = vmatprep.subr.msk.mxu0 %vm59_vm0, %v38_v0  ;;  %v15_v4 = vld [vmem:[%s677_s1] sm:$0xff]  ;;  %v22_v5 = vld [vmem:[%s678_s2 + $0x18] sm:$0xff]  ;;  %v20_v6 = vld [vmem:[%s678_s2 + $0x8] sm:$0xff] }
   0x3   :  { %424 = vmatpush3.xpose.msk.msra.mxu0 %vm59_vm0, %v38_v0  ;;  %455 = vmatprep.mubr.msk.f32.mxu0 %vm59_vm0, %v15_v4  ;;  %v35_v7 = vld [vmem:[%s676_s0 + $0x60] sm:$0xff]  ;;  %v21_v8 = vld [vmem:[%s678_s2 + $0x10] sm:$0xff] }
   0x4   :  { %425 = vmatprep.subr.msk.mxu0 %vm59_vm0, %v37_v1  ;;  %56 = vperm.xlu0 %476, %v22_v5  }
   0x5   :  { %46 = vperm.xlu1 %477, %v20_v6  }
   0x7   :  { %426 = vmatpush3.xpose.msk.msra.mxu0 %vm59_vm0, %v37_v1 }
   0x8   :  { %427 = vmatprep.subr.msk.mxu0 %vm59_vm0, %v36_v3 }
   0x9   :  { %8 = vsyncpa [#allocation3], 0  ;;  %v19_v9 = vld [vmem:[%s678_s2] sm:$0xff]  ;;  %51 = vperm.xlu0 %476, %v21_v8   ;;  %v34_v10 = vld [vmem:[%s676_s0 + $0x58] sm:$0xff]  ;;  %v521_v26 = vmov 0.0   ;;  %vm522_vm1 = vmmov 0  }
   0xa   :  { %v396_v11 = vld [vmem:[%s678_s2 + $0x20] sm:$0x3]  ;;  %41 = vperm.xlu1 %477, %v19_v9   ;;  %v33_v12 = vld [vmem:[%s676_s0 + $0x50] sm:$0xff]  ;;  %v32_v13 = vld [vmem:[%s676_s0 + $0x48] sm:$0xff]  ;;  %461 = vmatprep.subr.mxu1 %v521_v26  ;;  %vm266_vm10 = vcmask 261120   ;;  %vm340_vm11 = vcmask 1041408  }
   0xb   :  { %428 = vmatpush3.xpose.msk.msra.mxu0 %vm59_vm0, %v36_v3  ;;  %v31_v14 = vld [vmem:[%s676_s0 + $0x40] sm:$0xff]  ;;  %v30_v15 = vld [vmem:[%s676_s0 + $0x38] sm:$0xff]  ;;  %v29_v16 = vld [vmem:[%s676_s0 + $0x30] sm:$0xff]  ;;  %469 = vmatprep.mubr.msk.f32.mxu1 %vm522_vm1, %v521_v26 }
   0xc   :  { %429 = vmatprep.subr.msk.mxu0 %vm59_vm0, %v35_v7  ;;  %v28_v17 = vld [vmem:[%s676_s0 + $0x28] sm:$0xff]  ;;  %v27_v18 = vld [vmem:[%s676_s0 + $0x20] sm:$0xff]  ;;  %v26_v19 = vld [vmem:[%s676_s0 + $0x18] sm:$0xff] }
   0xd   :  { %263 = vperm.xlu0 %476, %v396_v11   ;;  %v25_v20 = vld [vmem:[%s676_s0 + $0x10] sm:$0xff]  ;;  %v24_v21 = vld [vmem:[%s676_s0 + $0x8] sm:$0xff]  ;;  %v23_v22 = vld [vmem:[%s676_s0] sm:$0xff] }
   0xe   :  { %v16_v23 = vld [vmem:[%s677_s1 + $0x8] sm:$0xff]  ;;  %v17_v24 = vld [vmem:[%s677_s1 + $0x10] sm:$0xff]  ;;  %v18_v25 = vld [vmem:[%s677_s1 + $0x18] sm:$0xff] }
   0xf   :  { %430 = vmatpush3.xpose.msk.msra.mxu0 %vm59_vm0, %v35_v7 }
  0x10   :  { %431 = vmatprep.subr.msk.mxu0 %vm59_vm0, %v34_v10 }
  0x13   :  { %432 = vmatpush3.xpose.msk.msra.mxu0 %vm59_vm0, %v34_v10 }
  0x14   :  { %433 = vmatprep.subr.msk.mxu0 %vm59_vm0, %v33_v12 }
  0x17   :  { %434 = vmatpush3.xpose.msk.msra.mxu0 %vm59_vm0, %v33_v12 }
  0x18   :  { %435 = vmatprep.subr.msk.mxu0 %vm59_vm0, %v32_v13 }
  0x1b   :  { %436 = vmatpush3.xpose.msk.msra.mxu0 %vm59_vm0, %v32_v13 }
  0x1c   :  { %437 = vmatprep.subr.msk.mxu0 %vm59_vm0, %v31_v14 }
  0x1f   :  { %438 = vmatpush3.xpose.msk.msra.mxu0 %vm59_vm0, %v31_v14 }
  0x20   :  { %439 = vmatprep.subr.msk.mxu0 %vm59_vm0, %v30_v15 }
  0x23   :  { %440 = vmatpush3.xpose.msk.msra.mxu0 %vm59_vm0, %v30_v15 }
  0x24   :  { %441 = vmatprep.subr.msk.mxu0 %vm59_vm0, %v29_v16 }
  0x27   :  { %442 = vmatpush3.xpose.msk.msra.mxu0 %vm59_vm0, %v29_v16 }
  0x28   :  { %443 = vmatprep.subr.msk.mxu0 %vm59_vm0, %v28_v17 }
  0x2b   :  { %444 = vmatpush3.xpose.msk.msra.mxu0 %vm59_vm0, %v28_v17 }
  0x2c   :  { %445 = vmatprep.subr.msk.mxu0 %vm59_vm0, %v27_v18 }
  0x2f   :  { %446 = vmatpush3.xpose.msk.msra.mxu0 %vm59_vm0, %v27_v18  ;;  %v395_v18 = vld [vmem:[%s677_s1 + $0x20] sm:$0x3]  ;;  %s523_s1 = smov [#allocation2]  }
  0x30   :  { %447 = vmatprep.subr.msk.mxu0 %vm59_vm0, %v26_v19  ;;  %s367_s8 = sshll.u32 %s523_s1, 4  ;;  %s368_s8 = int_to_ptr.vmem [resolvable:$true] %s367_s8 }
  0x31   :  { %s498_s9 = scalar_lea.vmem %s368_s8, 32  ;;  %p503_p1 = scmp.lt.s32.totalorder %s368_s8, %s368_s8 }
  0x32   :  { %p499_p0 = scmp.ne.s32.totalorder %s368_s8, %s498_s9  ;;  %p504_p2 = scmp.lt.s32.totalorder %s498_s9, %s498_s9 }
  0x33   :  { %448 = vmatpush3.xpose.msk.msra.mxu0 %vm59_vm0, %v26_v19 }
  0x34   :  { %449 = vmatprep.subr.msk.mxu0 %vm59_vm0, %v25_v20  ;;  %p505_p3 = por %p504_p2, %p503_p1 }
  0x36   :  { %p506_p4 = pnand %p505_p3, %p499_p0 }
  0x37   :  { %450 = vmatpush3.xpose.msk.msra.mxu0 %vm59_vm0, %v25_v20 }
  0x38   :  { %451 = vmatprep.subr.msk.mxu0 %vm59_vm0, %v24_v21 }
  0x3b   :  { %452 = vmatpush3.xpose.msk.msra.mxu0 %vm59_vm0, %v24_v21 }
  0x3c   :  { %453 = vmatprep.subr.msk.mxu0 %vm59_vm0, %v23_v22 }
  0x3f   :  { %454 = vmatpush3.xpose.msk.msra.mxu0 %vm59_vm0, %v23_v22 }
  0x42   :  { %456 = vmatmul.mubr.msk.f32.vlgmr.msra.gmra.mxu0 %vm59_vm0, %v16_v23 }
  0x43   :  { %458 = vmatprep.mubr.msk.f32.mxu0 %vm59_vm0, %v17_v24 }
  0x46   :  { %459 = vmatmul.mubr.msk.f32.gmra.mxu0 %vm59_vm0, %v18_v25 }
  0x7f   :  { %v57_v28 = vpop.permute.xlu0 %56 }
  0x80   :  { %v47_v27 = vpop.permute.xlu1 %46 }
  0x84   :  { %v52_v38 = vpop.permute.xlu0 %51 }
  0x85   :  { %v42_v30 = vpop.permute.xlu1 %41 }
  0x88   :  { %v264_v20 = vpop.permute.xlu0 %263 }
 0x102   :  { %v457_v29 = vpop.f32.mrf.mxu0 }
 0x103   :  { %v657_v31 = vadd.f32 %v457_v29, %v47_v27 }
 0x104   :  { %v186_v32 = vpop.f32.mrf.mxu0 }
 0x105   :  { %v211_v33 = vmul.f32 1.442695, %v657_v31  ;;  %v660_v34 = vadd.f32 %v186_v32, %v42_v30  ;;  %vm206_vm8 = vcmp.gt.f32.partialorder %v657_v31, 20.0 }
 0x106   :  { %v460_v35 = vpop.f32.mrf.mxu0 }
 0x107   :  { %478 = vpow2.f32 %v211_v33  ;;  %v209_v36 = vmul.f32 1.442695, %v660_v34  ;;  %v202_v37 = vadd.f32 %v460_v35, %v57_v28  ;;  %vm205_vm9 = vcmp.gt.f32.partialorder %v660_v34, 20.0 }
 0x108   :  { %v196_v39 = vpop.f32.mrf.mxu0 }
 0x109   :  { %480 = vpow2.f32 %v209_v36  ;;  %v215_v40 = vmul.f32 1.442695, %v202_v37  ;;  %v197_v41 = vadd.f32 %v196_v39, %v52_v38  ;;  %vm208_vm2 = vcmp.gt.f32.partialorder %v202_v37, 20.0 }
 0x10b   :  { %482 = vpow2.f32 %v215_v40  ;;  %v213_v42 = vmul.f32 1.442695, %v197_v41  ;;  %vm207_vm6 = vcmp.gt.f32.partialorder %v197_v41, 20.0 }
 0x10d   :  { %484 = vpow2.f32 %v213_v42 }
 0x114   :  { %v479_v43 = vpop.eup %478 }
 0x115   :  { %v226_v44 = vadd.f32 1.0, %v479_v43  ;;  %v229_v52 = vmul.f32 -0.5, %v479_v43  ;;  %v232_v63 = vand.u32 2147483647, %v479_v43 }
 0x116   :  { %v481_v45 = vpop.eup %480 }
 0x117   :  { %v217_v46 = vadd.f32 1.0, %v481_v45  ;;  %486 = vlog2.f32 %v226_v44  ;;  %v220_v55 = vmul.f32 -0.5, %v481_v45  ;;  %v230_v58 = vadd.f32 1.0, %v229_v52 }
 0x118   :  { %v483_v47 = vpop.eup %482  ;;  %v223_v6 = vand.u32 2147483647, %v481_v45  ;;  %vm233_vm5 = vcmp.lt.f32.partialorder %v232_v63, 0.0004427343 }
 0x119   :  { %v244_v48 = vadd.f32 1.0, %v483_v47  ;;  %488 = vlog2.f32 %v217_v46  ;;  %v247_v51 = vmul.f32 -0.5, %v483_v47  ;;  %v250_v57 = vand.u32 2147483647, %v483_v47 }
 0x11a   :  { %v485_v49 = vpop.eup %484  ;;  %v221_v3 = vadd.f32 1.0, %v220_v55  ;;  %v231_v5 = vmul.f32 %v479_v43, %v230_v58  ;;  %vm224_vm7 = vcmp.lt.f32.partialorder %v223_v6, 0.0004427343 }
 0x11b   :  { %490 = vlog2.f32 %v244_v48  ;;  %v235_v50 = vadd.f32 1.0, %v485_v49  ;;  %v238_v53 = vmul.f32 -0.5, %v485_v49  ;;  %v248_v54 = vadd.f32 1.0, %v247_v51 }
 0x11c   :  { %v241_v62 = vand.u32 2147483647, %v485_v49  ;;  %vm251_vm3 = vcmp.lt.f32.partialorder %v250_v57, 0.0004427343  ;;  %v222_v14 = vmul.f32 %v481_v45, %v221_v3 }
 0x11d   :  { %492 = vlog2.f32 %v235_v50  ;;  %v239_v60 = vadd.f32 1.0, %v238_v53  ;;  %v249_v1 = vmul.f32 %v483_v47, %v248_v54 }
 0x11e   :  { %vm242_vm4 = vcmp.lt.f32.partialorder %v241_v62, 0.0004427343 }
 0x11f   :  { %v240_v9 = vmul.f32 %v485_v49, %v239_v60 }
 0x124   :  { %v487_v56 = vpop.eup %486 }
 0x125   :  { %v228_v2 = vmul.f32 0.6931472, %v487_v56 }
 0x126   :  { %v489_v59 = vpop.eup %488 }
 0x127   :  { %v219_v10 = vmul.f32 0.6931472, %v489_v59  ;;  %v234_v13 = vsel %vm233_vm5, %v231_v5, %v228_v2 }
 0x128   :  { %v491_v61 = vpop.eup %490  ;;  %v254_v17 = vsel %vm206_vm8, %v657_v31, %v234_v13 }
 0x129   :  { %v246_v0 = vmul.f32 0.6931472, %v491_v61  ;;  %v225_v16 = vsel %vm224_vm7, %v222_v14, %v219_v10 }
 0x12a   :  { %v493_v4 = vpop.eup %492  ;;  %v253_v19 = vsel %vm205_vm9, %v660_v34, %v225_v16 }
 0x12b   :  { %v252_v7 = vsel %vm251_vm3, %v249_v1, %v246_v0  ;;  %v237_v8 = vmul.f32 0.6931472, %v493_v4 }
 0x12c   :  { %v256_v11 = vsel %vm208_vm2, %v202_v37, %v252_v7 }
 0x12d   :  { %462 = vmatpush3.msra.mxu1 %v256_v11  ;;  %v243_v12 = vsel %vm242_vm4, %v240_v9, %v237_v8 }
 0x12e   :  { %463 = vmatprep.subr.mxu1 %v521_v26  ;;  %v255_v15 = vsel %vm207_vm6, %v197_v41, %v243_v12 }
 0x12f   :  { %464 = vmatpush3.msra.mxu1 %v255_v15 }
 0x130   :  { %465 = vmatprep.subr.mxu1 %v521_v26 }
 0x131   :  { %466 = vmatpush3.msra.mxu1 %v254_v17 }
 0x132   :  { %467 = vmatprep.subr.mxu1 %v521_v26 }
 0x133   :  { %468 = vmatpush3.msra.mxu1 %v253_v19 }
 0x134   :  { %470 = vmatmul.mubr.msk.f32.vlgmr.msra.gmra.mxu1 %vm266_vm10, %v395_v18 }
 0x1f4   :  { %v336_v21 = vpop.f32.mrf.mxu1 }
 0x1f5   :  { %v337_v22 = vadd.f32 %v336_v21, %v264_v20 }
 0x1f6   :  { %v471_v23 = vpop.f32.mrf.mxu1 }
 0x1f7   :  { %v341_v24 = vsel %vm340_vm11, %v337_v22, -inf }
 0x1f8   :  { %v342_v25 = vrot.slane %v341_v24, 4 }
 0x1fa   :  { %v343_v27 = vmax.f32 %v341_v24, %v342_v25 }
 0x1fc   :  { %v344_v28 = vrot.slane %v343_v27, 2 }
 0x1fe   :  { %v345_v29 = vmax.f32 %v343_v27, %v344_v28 }
 0x200   :  { %v346_v30 = vrot.slane %v345_v29, 1 }
 0x202   :  { %v347_v31 = vmax.f32 %v345_v29, %v346_v30 }
 0x204   :  { %v348_v32 = vsub.f32 %v337_v22, %v347_v31 }
 0x206   :  { %v349_v33 = vmul.f32 1.442695, %v348_v32 }
 0x208   :  { %494 = vpow2.f32 %v349_v33 }
 0x215   :  { %v495_v26 = vpop.eup %494 }
 0x216   :  { %v351_v35 = vsel %vm340_vm11, %v495_v26, 0.0 }
 0x217   :  { %v352_v34 = vrot.slane %v351_v35, 4 }
 0x219   :  { %v353_v36 = vadd.f32 %v352_v34, %v351_v35 }
 0x21b   :  { %v354_v37 = vrot.slane %v353_v36, 2 }
 0x21d   :  { %v355_v38 = vadd.f32 %v354_v37, %v353_v36 }
 0x21f   :  { %v356_v39 = vrot.slane %v355_v38, 1 }
 0x221   :  { %v357_v40 = vadd.f32 %v356_v39, %v355_v38 }
 0x223   :  { %496 = vrcp.f32 %v357_v40 }
 0x230   :  { %v497_v41 = vpop.eup %496 }
 0x231   :  { %v359_v42 = vmul.f32 %v497_v41, %v495_v26 }
 0x233   :  { %360 = vst [vmem:[#allocation2] sm:$0x3] %v359_v42 }
 0x234   :  { %509 = shalt.err (!%p506_p4)
}
 0x235   :  { %370 = dma.vmem_to_hbm [thread:$0]  %s368_s8, 32, %s679_s3, [#allocation3]  }
 0x236   :  { %518 = dma.done.wait [#allocation3], 32  }
 0x237   :  { %519 = vsyncadd [#allocation3], 4294967264 }
 0x238   :  { %374 = vsyncpa [#allocation3], 1 }

</bundles_post_ra>
